<compile_context>
chip_gen: v6e
topology: v6e:2x2x1
jax: 0.10.0
libtpu: 0.0.40
codegen_flags: <defaults>
</compile_context>

<pallas_src>
import jax
import jax.numpy as jnp
from jax.experimental import pallas as pl
from jax.experimental.pallas import tpu as pltpu

# per-type [dmin, dmax] tables from the module (types 1..6)
DMIN = (2.8, 2.8, 2.4, 2.4, 2.0, 3.0)
DMAX = (7.5, 7.5, 4.1, 4.1, 4.0, 7.0)
EPS1 = 0.1
EPS2 = 0.1

LANES = 128   # lane width (edges per row)
SUB = 8       # sublane granularity
R_MAX = 64    # max sublane-rows per tile -> up to R_MAX*LANES = 8192 edges per grid step


def _guidance_kernel(p1_ref, p2_ref, t_ref, out_ref):
    # p1_ref / p2_ref : (3, R, 128) f32   endpoint coords, lane-dense over edges
    # t_ref           : (R, 128)    i32   edge types
    # out_ref         : (8, 128)    f32   per-block partial sums (leading block dim squeezed)
    dx = p1_ref[0] - p2_ref[0]
    dy = p1_ref[1] - p2_ref[1]
    dz = p1_ref[2] - p2_ref[2]
    d = jnp.sqrt(dx * dx + dy * dy + dz * dz)              # (R, 128); sqrt goes to EUP

    t = t_ref[...]                                         # (R, 128) int32
    # type -> (dmin, dmax); -inf/+inf defaults make out-of-range types (incl. padding
    # type 0) produce zero hinges with no explicit validity mask.
    dmin = jnp.full(d.shape, -jnp.inf, jnp.float32)
    dmax = jnp.full(d.shape, jnp.inf, jnp.float32)
    for i in range(6):
        sel = t == (i + 1)
        dmin = jnp.where(sel, jnp.float32(DMIN[i]), dmin)
        dmax = jnp.where(sel, jnp.float32(DMAX[i]), dmax)

    left = jnp.maximum(d - dmax, 0.0)
    right = jnp.maximum(dmin - d, 0.0)
    if EPS1 == EPS2:
        drift = jnp.float32(EPS1) * (left + right)
    else:
        drift = jnp.float32(EPS1) * left + jnp.float32(EPS2) * right

    # Reduce (R,128) -> (8,128) with pure vreg-wise VPU adds (static sublane-aligned
    # slices); the single cross-lane/sublane reduction happens once in the wrapper.
    R = drift.shape[0]
    acc = drift[0:SUB, :]
    for g in range(1, R // SUB):
        acc = acc + drift[g * SUB:(g + 1) * SUB, :]
    out_ref[...] = acc


def inter_bond_distance_guidance(x1, x2, e12_type, e12_index):
    """x1: (N1, 3), x2: (N2, 3), e12_type: (E,) int, e12_index: (2, E) int -> scalar f32."""
    E = int(e12_type.shape[0])
    if E == 0:
        return jnp.float32(0.0)

    rows = -(-E // LANES)                                   # rows of 128 edges
    R = min(R_MAX, ((rows + SUB - 1) // SUB) * SUB)         # sublane rows per tile
    edges_per_tile = R * LANES
    num_blocks = -(-E // edges_per_tile)
    E_pad = num_blocks * edges_per_tile

    # gather endpoint coordinates directly into the lane-dense (3, E) layout (plain-JAX glue)
    p1 = jnp.take(x1.astype(jnp.float32).T, e12_index[0], axis=1)   # (3, E)
    p2 = jnp.take(x2.astype(jnp.float32).T, e12_index[1], axis=1)   # (3, E)
    p1 = jnp.pad(p1, ((0, 0), (0, E_pad - E))).reshape(3, num_blocks * R, LANES)
    p2 = jnp.pad(p2, ((0, 0), (0, E_pad - E))).reshape(3, num_blocks * R, LANES)
    t = jnp.pad(e12_type.astype(jnp.int32), (0, E_pad - E)).reshape(num_blocks * R, LANES)

    partials = pl.pallas_call(
        _guidance_kernel,
        out_shape=jax.ShapeDtypeStruct((num_blocks, SUB, LANES), jnp.float32),
        grid_spec=pltpu.PrefetchScalarGridSpec(
            num_scalar_prefetch=0,
            grid=(num_blocks,),
            in_specs=[
                pl.BlockSpec((3, R, LANES), lambda k: (0, k, 0)),
                pl.BlockSpec((3, R, LANES), lambda k: (0, k, 0)),
                pl.BlockSpec((R, LANES), lambda k: (k, 0)),
            ],
            out_specs=pl.BlockSpec((None, SUB, LANES), lambda k: (k, 0, 0)),
        ),
        compiler_params=pltpu.CompilerParams(
            dimension_semantics=("parallel",)),   # shards across both TCs on v7x
    )(p1, p2, t)

    return jnp.sum(partials)


def _reference(x1, x2, e12_type, e12_index):
    # pure-JAX reference mirroring the PyTorch module
    d = jnp.linalg.norm(x1[e12_index[0]] - x2[e12_index[1]], axis=1)
    t = jnp.clip(e12_type, 0, 6)
    dmin_tab = jnp.array([0.0] + list(DMIN), jnp.float32)[t]
    dmax_tab = jnp.array([0.0] + list(DMAX), jnp.float32)[t]
    drift = EPS1 * jnp.maximum(d - dmax_tab, 0.0) + EPS2 * jnp.maximum(dmin_tab - d, 0.0)
    drift = jnp.where((e12_type >= 1) & (e12_type <= 6), drift, 0.0)
    return jnp.sum(drift)


def _make_inputs(key, N1, N2, E):
    k1, k2, k3, k4, k5 = jax.random.split(key, 5)
    x1 = jax.random.normal(k1, (N1, 3), jnp.float32) * 4.0
    x2 = jax.random.normal(k2, (N2, 3), jnp.float32) * 4.0
    e12_type = jax.random.randint(k3, (E,), 0, 7, jnp.int32)       # 0..6 (0 = no bond)
    idx0 = jax.random.randint(k4, (E,), 0, N1, jnp.int32)
    idx1 = jax.random.randint(k5, (E,), 0, N2, jnp.int32)
    e12_index = jnp.stack([idx0, idx1], axis=0)                    # (2, E)
    return x1, x2, e12_type, e12_index


if __name__ == "__main__":
    key = jax.random.PRNGKey(0)
    k_small, k_big = jax.random.split(key)

    # small case (single 1024-edge tile, grid of 1)
    x1, x2, et, ei = _make_inputs(k_small, 10, 12, 8)
    out = jax.block_until_ready(inter_bond_distance_guidance(x1, x2, et, ei))
    ref = jax.block_until_ready(_reference(x1, x2, et, ei))
    assert jnp.allclose(out, ref, rtol=1e-4, atol=1e-4), (out, ref)

    # multi-block case (2 grid steps of 8192 edges, exercises parallel partial sums)
    x1, x2, et, ei = _make_inputs(k_big, 64, 64, 10000)
    out = jax.block_until_ready(inter_bond_distance_guidance(x1, x2, et, ei))
    ref = jax.block_until_ready(_reference(x1, x2, et, ei))
    assert jnp.allclose(out, ref, rtol=1e-4, atol=1e-4), (out, ref)

    print("KERNEL_OK")
</pallas_src>

<mosaic_0001>
module attributes {stable_mosaic.version = 11 : i64} {
  func.func @_guidance_kernel(%arg0: i32, %arg1: memref<3x8x128xf32, #tpu.memory_space<vmem>>, %arg2: memref<3x8x128xf32, #tpu.memory_space<vmem>>, %arg3: memref<8x128xi32, #tpu.memory_space<vmem>>, %arg4: memref<1x8x128xf32, #tpu.memory_space<vmem>>) attributes {dimension_semantics = [#tpu.dimension_semantics<parallel>], iteration_bounds = array<i64: 1>, scalar_prefetch = 0 : i64, scratch_operands = 0 : i64, tpu.core_type = #tpu.core_type<tc>, window_params = [{transform_indices = @transform_0, window_bounds = array<i64: 3, 8, 128>}, {transform_indices = @transform_1, window_bounds = array<i64: 3, 8, 128>}, {transform_indices = @transform_2, window_bounds = array<i64: 8, 128>}, {transform_indices = @transform_3, window_bounds = array<i64: 1, 8, 128>}]} {
    %c0 = arith.constant 0 : index
    %c0_0 = arith.constant 0 : index
    %c0_1 = arith.constant 0 : index
    %0 = vector.load %arg1[%c0, %c0_0, %c0_1] : memref<3x8x128xf32, #tpu.memory_space<vmem>>, vector<1x8x128xf32>
    %1 = vector.shape_cast %0 : vector<1x8x128xf32> to vector<8x128xf32>
    %c0_2 = arith.constant 0 : index
    %c0_3 = arith.constant 0 : index
    %c0_4 = arith.constant 0 : index
    %2 = vector.load %arg2[%c0_2, %c0_3, %c0_4] : memref<3x8x128xf32, #tpu.memory_space<vmem>>, vector<1x8x128xf32>
    %3 = vector.shape_cast %2 : vector<1x8x128xf32> to vector<8x128xf32>
    %4 = arith.subf %1, %3 : vector<8x128xf32>
    %c1 = arith.constant 1 : index
    %c0_5 = arith.constant 0 : index
    %c0_6 = arith.constant 0 : index
    %5 = vector.load %arg1[%c1, %c0_5, %c0_6] : memref<3x8x128xf32, #tpu.memory_space<vmem>>, vector<1x8x128xf32>
    %6 = vector.shape_cast %5 : vector<1x8x128xf32> to vector<8x128xf32>
    %c1_7 = arith.constant 1 : index
    %c0_8 = arith.constant 0 : index
    %c0_9 = arith.constant 0 : index
    %7 = vector.load %arg2[%c1_7, %c0_8, %c0_9] : memref<3x8x128xf32, #tpu.memory_space<vmem>>, vector<1x8x128xf32>
    %8 = vector.shape_cast %7 : vector<1x8x128xf32> to vector<8x128xf32>
    %9 = arith.subf %6, %8 : vector<8x128xf32>
    %c2 = arith.constant 2 : index
    %c0_10 = arith.constant 0 : index
    %c0_11 = arith.constant 0 : index
    %10 = vector.load %arg1[%c2, %c0_10, %c0_11] : memref<3x8x128xf32, #tpu.memory_space<vmem>>, vector<1x8x128xf32>
    %11 = vector.shape_cast %10 : vector<1x8x128xf32> to vector<8x128xf32>
    %c2_12 = arith.constant 2 : index
    %c0_13 = arith.constant 0 : index
    %c0_14 = arith.constant 0 : index
    %12 = vector.load %arg2[%c2_12, %c0_13, %c0_14] : memref<3x8x128xf32, #tpu.memory_space<vmem>>, vector<1x8x128xf32>
    %13 = vector.shape_cast %12 : vector<1x8x128xf32> to vector<8x128xf32>
    %14 = arith.subf %11, %13 : vector<8x128xf32>
    %15 = arith.mulf %4, %4 : vector<8x128xf32>
    %16 = arith.mulf %9, %9 : vector<8x128xf32>
    %17 = arith.addf %15, %16 : vector<8x128xf32>
    %18 = arith.mulf %14, %14 : vector<8x128xf32>
    %19 = arith.addf %17, %18 : vector<8x128xf32>
    %20 = math.sqrt %19 : vector<8x128xf32>
    %c0_15 = arith.constant 0 : index
    %c0_16 = arith.constant 0 : index
    %21 = vector.load %arg3[%c0_15, %c0_16] : memref<8x128xi32, #tpu.memory_space<vmem>>, vector<8x128xi32>
    %cst = arith.constant 0xFF800000 : f32
    %22 = vector.broadcast %cst : f32 to vector<8x128xf32>
    %cst_17 = arith.constant 0x7F800000 : f32
    %23 = vector.broadcast %cst_17 : f32 to vector<8x128xf32>
    %c1_i32 = arith.constant 1 : i32
    %24 = vector.broadcast %c1_i32 : i32 to vector<8x128xi32>
    %25 = arith.cmpi eq, %21, %24 : vector<8x128xi32>
    %cst_18 = arith.constant 2.800000e+00 : f32
    %26 = vector.broadcast %cst_18 : f32 to vector<8x128xf32>
    %27 = arith.select %25, %26, %22 : vector<8x128xi1>, vector<8x128xf32>
    %cst_19 = arith.constant 7.500000e+00 : f32
    %28 = vector.broadcast %cst_19 : f32 to vector<8x128xf32>
    %29 = arith.select %25, %28, %23 : vector<8x128xi1>, vector<8x128xf32>
    %c2_i32 = arith.constant 2 : i32
    %30 = vector.broadcast %c2_i32 : i32 to vector<8x128xi32>
    %31 = arith.cmpi eq, %21, %30 : vector<8x128xi32>
    %cst_20 = arith.constant 2.800000e+00 : f32
    %32 = vector.broadcast %cst_20 : f32 to vector<8x128xf32>
    %33 = arith.select %31, %32, %27 : vector<8x128xi1>, vector<8x128xf32>
    %cst_21 = arith.constant 7.500000e+00 : f32
    %34 = vector.broadcast %cst_21 : f32 to vector<8x128xf32>
    %35 = arith.select %31, %34, %29 : vector<8x128xi1>, vector<8x128xf32>
    %c3_i32 = arith.constant 3 : i32
    %36 = vector.broadcast %c3_i32 : i32 to vector<8x128xi32>
    %37 = arith.cmpi eq, %21, %36 : vector<8x128xi32>
    %cst_22 = arith.constant 2.400000e+00 : f32
    %38 = vector.broadcast %cst_22 : f32 to vector<8x128xf32>
    %39 = arith.select %37, %38, %33 : vector<8x128xi1>, vector<8x128xf32>
    %cst_23 = arith.constant 4.100000e+00 : f32
    %40 = vector.broadcast %cst_23 : f32 to vector<8x128xf32>
    %41 = arith.select %37, %40, %35 : vector<8x128xi1>, vector<8x128xf32>
    %c4_i32 = arith.constant 4 : i32
    %42 = vector.broadcast %c4_i32 : i32 to vector<8x128xi32>
    %43 = arith.cmpi eq, %21, %42 : vector<8x128xi32>
    %cst_24 = arith.constant 2.400000e+00 : f32
    %44 = vector.broadcast %cst_24 : f32 to vector<8x128xf32>
    %45 = arith.select %43, %44, %39 : vector<8x128xi1>, vector<8x128xf32>
    %cst_25 = arith.constant 4.100000e+00 : f32
    %46 = vector.broadcast %cst_25 : f32 to vector<8x128xf32>
    %47 = arith.select %43, %46, %41 : vector<8x128xi1>, vector<8x128xf32>
    %c5_i32 = arith.constant 5 : i32
    %48 = vector.broadcast %c5_i32 : i32 to vector<8x128xi32>
    %49 = arith.cmpi eq, %21, %48 : vector<8x128xi32>
    %cst_26 = arith.constant 2.000000e+00 : f32
    %50 = vector.broadcast %cst_26 : f32 to vector<8x128xf32>
    %51 = arith.select %49, %50, %45 : vector<8x128xi1>, vector<8x128xf32>
    %cst_27 = arith.constant 4.000000e+00 : f32
    %52 = vector.broadcast %cst_27 : f32 to vector<8x128xf32>
    %53 = arith.select %49, %52, %47 : vector<8x128xi1>, vector<8x128xf32>
    %c6_i32 = arith.constant 6 : i32
    %54 = vector.broadcast %c6_i32 : i32 to vector<8x128xi32>
    %55 = arith.cmpi eq, %21, %54 : vector<8x128xi32>
    %cst_28 = arith.constant 3.000000e+00 : f32
    %56 = vector.broadcast %cst_28 : f32 to vector<8x128xf32>
    %57 = arith.select %55, %56, %51 : vector<8x128xi1>, vector<8x128xf32>
    %cst_29 = arith.constant 7.000000e+00 : f32
    %58 = vector.broadcast %cst_29 : f32 to vector<8x128xf32>
    %59 = arith.select %55, %58, %53 : vector<8x128xi1>, vector<8x128xf32>
    %60 = arith.subf %20, %59 : vector<8x128xf32>
    %cst_30 = arith.constant 0.000000e+00 : f32
    %61 = vector.broadcast %cst_30 : f32 to vector<8x128xf32>
    %62 = arith.maximumf %60, %61 : vector<8x128xf32>
    %63 = arith.subf %57, %20 : vector<8x128xf32>
    %cst_31 = arith.constant 0.000000e+00 : f32
    %64 = vector.broadcast %cst_31 : f32 to vector<8x128xf32>
    %65 = arith.maximumf %63, %64 : vector<8x128xf32>
    %66 = arith.addf %62, %65 : vector<8x128xf32>
    %cst_32 = arith.constant 1.000000e-01 : f32
    %67 = vector.broadcast %cst_32 : f32 to vector<8x128xf32>
    %68 = arith.mulf %67, %66 : vector<8x128xf32>
    %c0_33 = arith.constant 0 : index
    %c0_34 = arith.constant 0 : index
    %c0_35 = arith.constant 0 : index
    %69 = vector.load %arg4[%c0_33, %c0_34, %c0_35] : memref<1x8x128xf32, #tpu.memory_space<vmem>>, vector<1x8x128xf32>
    %70 = vector.shape_cast %69 : vector<1x8x128xf32> to vector<8x128xf32>
    %71 = vector.shape_cast %68 : vector<8x128xf32> to vector<1x8x128xf32>
    tpu.vector_store %arg4[%c0_33, %c0_34, %c0_35], %71 {strides = array<i32>} : memref<1x8x128xf32, #tpu.memory_space<vmem>>, vector<1x8x128xf32>,
    return
  }
  func.func @transform_0(%arg0: i32) -> (i32, i32, i32) {
    %c0_i32 = arith.constant 0 : i32
    %c0_i32_0 = arith.constant 0 : i32
    %c0_i32_1 = arith.constant 0 : i32
    return %c0_i32, %arg0, %c0_i32_0 : i32, i32, i32
  }
  func.func @transform_1(%arg0: i32) -> (i32, i32, i32) {
    %c0_i32 = arith.constant 0 : i32
    %c0_i32_0 = arith.constant 0 : i32
    %c0_i32_1 = arith.constant 0 : i32
    return %c0_i32, %arg0, %c0_i32_0 : i32, i32, i32
  }
  func.func @transform_2(%arg0: i32) -> (i32, i32) {
    %c0_i32 = arith.constant 0 : i32
    %c0_i32_0 = arith.constant 0 : i32
    return %arg0, %c0_i32 : i32, i32
  }
  func.func @transform_3(%arg0: i32) -> (i32, i32, i32) {
    %c0_i32 = arith.constant 0 : i32
    %c0_i32_0 = arith.constant 0 : i32
    %c0_i32_1 = arith.constant 0 : i32
    return %arg0, %c0_i32, %c0_i32_0 : i32, i32, i32
  }
}

</mosaic_0001>

<bundles_post_ra>
// kernel: tpu_custom_call.1
= control target key start
LH: loop header
LB: loop body
LE: loop exit
PB: predicated region body
PF: predicated region fallthrough
CT: control target
= control target key end

     0   :  { %8 = vsyncpa [#allocation3], 0  ;;  %s257_s0 = inlined_call_operand.hbm [shape: f32[3,8,128], index: 0, kind: input, shape index: {}]   ;;  %s258_s1 = inlined_call_operand.hbm [shape: f32[3,8,128], index: 1, kind: input, shape index: {}]   ;;  %s259_s2 = inlined_call_operand.hbm [shape: s32[8,128], index: 2, kind: input, shape index: {}]   ;;  %s260_s3 = inlined_call_operand.hbm [shape: f32[1,8,128], index: 3, kind: output, shape index: {}]  }
   0x1   :  { %9 = vsyncpa [#allocation6], 0 }
   0x2   :  { %10 = vsyncpa [#allocation4], 0  ;;  %s217_s12 = smov [#allocation5]   ;;  %s218_s14 = smov [#allocation2]  }
   0x3   :  { %s28_s13 = sshll.u32 %s217_s12, 4  ;;  %s16_s15 = sshll.u32 %s218_s14, 4  ;;  %s29_s13 = int_to_ptr.vmem [resolvable:$true] %s28_s13  ;;  %s17_s15 = int_to_ptr.vmem [resolvable:$true] %s16_s15 }
   0x4   :  { %s139_s16 = scalar_lea.vmem %s29_s13, 384  ;;  %p144_p1 = scmp.lt.s32.totalorder %s29_s13, %s29_s13 }
   0x5   :  { %p140_p0 = scmp.ne.s32.totalorder %s29_s13, %s139_s16  ;;  %p145_p2 = scmp.lt.s32.totalorder %s139_s16, %s139_s16 }
   0x7   :  { %p146_p3 = por %p145_p2, %p144_p1 }
   0x9   :  { %p147_p4 = pnand %p146_p3, %p140_p0 }
   0xb   :  { %150 = shalt.err (!%p147_p4)
}
   0xc   :  { %s219_s17 = smov 128   ;;  %s220_s18 = smov 8  }
   0xd   :  { %34 = dma.hbm_to_vmem [thread:$0]  %s258_s1, 384, %s29_s13, [#allocation6], %s219_s17, %s219_s17, %s220_s18  }
   0xe   :  { %s159_s21 = scalar_lea.vmem %s17_s15, 384  ;;  %p164_p6 = scmp.lt.s32.totalorder %s17_s15, %s17_s15 }
   0xf   :  { %p160_p5 = scmp.ne.s32.totalorder %s17_s15, %s159_s21  ;;  %p165_p7 = scmp.lt.s32.totalorder %s159_s21, %s159_s21 }
  0x11   :  { %p166_p8 = por %p165_p7, %p164_p6 }
  0x13   :  { %p167_p9 = pnand %p166_p8, %p160_p5 }
  0x15   :  { %170 = shalt.err (!%p167_p9)
}
  0x16   :  { %22 = dma.hbm_to_vmem [thread:$0]  %s257_s0, 384, %s17_s15, [#allocation3], %s219_s17, %s219_s17, %s220_s18  }
  0x17   :  { %s221_s24 = smov [#allocation7]  }
  0x18   :  { %s41_s25 = sshll.u32 %s221_s24, 4  ;;  %s42_s25 = int_to_ptr.vmem [resolvable:$true] %s41_s25 }
  0x19   :  { %s179_s26 = scalar_lea.vmem %s42_s25, 128  ;;  %p184_p11 = scmp.lt.s32.totalorder %s42_s25, %s42_s25 }
  0x1a   :  { %p180_p10 = scmp.ne.s32.totalorder %s42_s25, %s179_s26  ;;  %p185_p12 = scmp.lt.s32.totalorder %s179_s26, %s179_s26 }
  0x1c   :  { %p186_p13 = por %p185_p12, %p184_p11 }
  0x1e   :  { %p187_p0 = pnand %p186_p13, %p180_p10 }
  0x20   :  { %190 = shalt.err (!%p187_p0)
}
  0x21   :  { %44 = dma.hbm_to_vmem [thread:$0]  %s259_s2, 128, %s42_s25, [#allocation6]  }
  0x22   :  { %211 = dma.done.wait [#allocation3], 384  }
  0x23   :  { %212 = vsyncadd [#allocation3], 4294966912 }
  0x24   :  { %213 = dma.done.wait [#allocation6], 512  }
  0x25   :  { %214 = vsyncadd [#allocation6], 4294966784  ;;  %v54_v0 = vld [vmem:[#allocation2] sm:$0xff]  ;;  %v55_v1 = vld [vmem:[#allocation5] sm:$0xff]  ;;  %v222_v15 = vmov -inf   ;;  %v223_v17 = vmov inf  }
  0x26   :  { %v58_v2 = vld [vmem:[#allocation2 + $0x8] sm:$0xff]  ;;  %v56_v3 = vsub.f32 %v54_v0, %v55_v1  ;;  %v60_v4 = vld [vmem:[#allocation5 + $0x8] sm:$0xff]  ;;  %v63_v5 = vld [vmem:[#allocation2 + $0x10] sm:$0xff]  ;;  %s224_s0 = smov [#allocation8]  }
  0x27   :  { %v65_v6 = vld [vmem:[#allocation5 + $0x10] sm:$0xff]  ;;  %v61_v7 = vsub.f32 %v58_v2, %v60_v4  ;;  %v79_v12 = vld [vmem:[#allocation7] sm:$0xff]  ;;  %s111_s2 = sshll.u32 %s224_s0, 4  ;;  %s112_s2 = int_to_ptr.vmem [resolvable:$true] %s111_s2 }
  0x28   :  { %v66_v8 = vsub.f32 %v63_v5, %v65_v6  ;;  %v67_v9 = vmul.f32 %v56_v3, %v56_v3  ;;  %vm80_vm0 = vcmp.eq.s32.totalorder %v79_v12, 1  ;;  %vm83_vm1 = vcmp.eq.s32.totalorder %v79_v12, 2  ;;  %s191_s28 = scalar_lea.vmem %s112_s2, 128  ;;  %p196_p2 = scmp.lt.s32.totalorder %s112_s2, %s112_s2 }
  0x29   :  { %v68_v10 = vmul.f32 %v61_v7, %v61_v7  ;;  %v81_v16 = vsel %vm80_vm0, 2.8, %v222_v15  ;;  %v82_v18 = vsel %vm80_vm0, 7.5, %v223_v17  ;;  %vm86_vm2 = vcmp.eq.s32.totalorder %v79_v12, 3  ;;  %p192_p1 = scmp.ne.s32.totalorder %s112_s2, %s191_s28  ;;  %p197_p3 = scmp.lt.s32.totalorder %s191_s28, %s191_s28 }
  0x2a   :  { %v70_v11 = vmul.f32 %v66_v8, %v66_v8  ;;  %v84_v19 = vsel %vm83_vm1, 2.8, %v81_v16  ;;  %v85_v20 = vsel %vm83_vm1, 7.5, %v82_v18  ;;  %vm89_vm3 = vcmp.eq.s32.totalorder %v79_v12, 4 }
  0x2b   :  { %v69_v13 = vadd.f32 %v68_v10, %v67_v9  ;;  %v87_v21 = vsel %vm86_vm2, 2.4, %v84_v19  ;;  %v88_v22 = vsel %vm86_vm2, 4.1, %v85_v20  ;;  %vm92_vm4 = vcmp.eq.s32.totalorder %v79_v12, 5  ;;  %p198_p4 = por %p197_p3, %p196_p2 }
  0x2c   :  { %v90_v23 = vsel %vm89_vm3, 2.4, %v87_v21  ;;  %v91_v24 = vsel %vm89_vm3, 4.1, %v88_v22  ;;  %vm95_vm5 = vcmp.eq.s32.totalorder %v79_v12, 6 }
  0x2d   :  { %v71_v14 = vadd.f32 %v70_v11, %v69_v13  ;;  %v93_v25 = vsel %vm92_vm4, 2.0, %v90_v23  ;;  %v94_v26 = vsel %vm92_vm4, 4.0, %v91_v24  ;;  %p199_p5 = pnand %p198_p4, %p192_p1 }
  0x2e   :  { %v96_v30 = vsel %vm95_vm5, 3.0, %v93_v25  ;;  %v97_v31 = vsel %vm95_vm5, 7.0, %v94_v26 }
  0x2f   :  { %129 = vrsqrt.f32 %v71_v14  ;;  %vm74_vm6 = vcmp.eq.f32.partialorder %v71_v14, inf  ;;  %v77_v28 = vand.u32 2147483648, %v71_v14  ;;  %vm76_vm7 = vcmp.eq.f32.partialorder %v71_v14, 0.0 }
  0x3c   :  { %v130_v27 = vpop.eup %129 }
  0x3d   :  { %v73_v29 = vmul.f32 %v130_v27, %v71_v14 }
  0x3f   :  { %v75_v32 = vsel %vm74_vm6, %v71_v14, %v73_v29 }
  0x40   :  { %v78_v33 = vsel %vm76_vm7, %v77_v28, %v75_v32 }
  0x41   :  { %v98_v34 = vsub.f32 %v78_v33, %v97_v31  ;;  %v100_v35 = vsub.f32 %v96_v30, %v78_v33 }
  0x43   :  { %v99_v36 = vmax.f32 %v98_v34, 0.0  ;;  %v101_v37 = vmax.f32 %v100_v35, 0.0 }
  0x45   :  { %v102_v38 = vadd.f32 %v101_v37, %v99_v36 }
  0x47   :  { %v103_v39 = vmul.f32 0.1, %v102_v38 }
  0x49   :  { %104 = vst [vmem:[#allocation8] sm:$0xff] %v103_v39 }
  0x4a   :  { %202 = shalt.err (!%p199_p5)
}
  0x4b   :  { %114 = dma.vmem_to_hbm [thread:$0]  %s112_s2, 128, %s260_s3, [#allocation4]  }
  0x4c   :  { %215 = dma.done.wait [#allocation4], 128  }
  0x4d   :  { %216 = vsyncadd [#allocation4], 4294967168 }
  0x4e   :  { %118 = vsyncpa [#allocation3], 1 }
  0x4f   :  { %119 = vsyncpa [#allocation6], 1 }
  0x50   :  { %120 = vsyncpa [#allocation4], 1 }

</bundles_post_ra>
